<compile_context>
chip_gen: v6e
topology: v6e:2x2x1
jax: 0.10.0
libtpu: 0.0.40
codegen_flags: <defaults>
</compile_context>

<pallas_src>
import functools

import jax
import jax.numpy as jnp
from jax.experimental import pallas as pl
from jax.experimental.pallas import tpu as pltpu

IN_FEATURES = 100
HIDDEN = 1024
OUTPUT_SIZE = 16          # example output_size
LANE = 128
MAX_TM = 2048             # batch-tile cap (~16 MiB/step VMEM, all generations)


def _round_up(x, m):
    return ((x + m - 1) // m) * m


def _num_tensorcores():
    """Best-effort: 2 for megacore chips (v4 / v5p / v7x), else 1."""
    try:
        kind = jax.devices()[0].device_kind.lower()
    except Exception:
        return 1
    return 2 if any(tag in kind for tag in ("v4", "v5p", "v7")) else 1


def _pick_tm(batch, num_tc):
    tm = min(MAX_TM, _round_up(batch, 16))          # 16: native bf16 sublane pack
    if num_tc > 1 and batch > 16:
        # Guarantee >=2 grid steps so the "parallel" axis shards across both TCs.
        tm = min(tm, _round_up(pl.cdiv(batch, num_tc), 16))
    return max(tm, 16)


def mlp_kernel(x_ref, w1_ref, b1_ref, w2_ref, b2_ref, o_ref):
    # layer1: [tm,100]f32 -> bf16 @ [100,1024]bf16, f32 accumulation on the MXU.
    x = x_ref[...].astype(jnp.bfloat16)
    h = jnp.dot(x, w1_ref[...], preferred_element_type=jnp.float32)
    # Fused bias + ReLU + downcast: single pass over the f32 hidden activations.
    h = jnp.maximum(h + b1_ref[...], 0.0).astype(jnp.bfloat16)
    # layer2: [tm,1024]bf16 @ [1024,O_pad]bf16 -> f32 acc, bias add in f32.
    out = jnp.dot(h, w2_ref[...], preferred_element_type=jnp.float32) + b2_ref[...]
    o_ref[...] = out.astype(o_ref.dtype)


def prepare_params(w1, b1, w2, b2):
    """One-time weight padding/casting, hoisted out of the per-call hot path."""
    out_features = w2.shape[1]
    o_pad = _round_up(max(out_features, LANE), LANE)          # lane-dense output
    w1_p = w1.astype(jnp.bfloat16)                            # [100, 1024]
    b1_p = b1.reshape(1, HIDDEN).astype(jnp.float32)          # [1, 1024]
    w2_p = jnp.zeros((HIDDEN, o_pad), jnp.bfloat16).at[:, :out_features].set(
        w2.astype(jnp.bfloat16))                              # [1024, O_pad]
    b2_p = jnp.zeros((1, o_pad), jnp.float32).at[0, :out_features].set(
        b2.astype(jnp.float32))                               # [1, O_pad]
    return w1_p, b1_p, w2_p, b2_p, out_features


@functools.partial(jax.jit, static_argnames=("out_features",))
def neural_network_forward(x, w1_p, b1_p, w2_p, b2_p, out_features):
    """x: [B, 100] f32; prepared params from `prepare_params`."""
    B, K = x.shape
    o_pad = w2_p.shape[1]

    TM = _pick_tm(B, _num_tensorcores())
    B_pad = _round_up(B, TM)
    # Fast path: tile-aligned batches go straight to the kernel (no HBM copy of x);
    # unaligned batches get a rows-only f32 zero pad (padded rows are sliced off).
    x_in = x if B_pad == B else jnp.pad(x, ((0, B_pad - B), (0, 0)))

    grid = (B_pad // TM,)
    out = pl.pallas_call(
        mlp_kernel,
        out_shape=jax.ShapeDtypeStruct((B_pad, o_pad), jnp.float32),
        grid_spec=pl.GridSpec(
            grid=grid,
            in_specs=[
                pl.BlockSpec((TM, K), lambda i: (i, 0)),          # x tile
                pl.BlockSpec((K, HIDDEN), lambda i: (0, 0)),      # W1 resident
                pl.BlockSpec((1, HIDDEN), lambda i: (0, 0)),      # b1 resident
                pl.BlockSpec((HIDDEN, o_pad), lambda i: (0, 0)),  # W2 resident
                pl.BlockSpec((1, o_pad), lambda i: (0, 0)),       # b2 resident
            ],
            out_specs=pl.BlockSpec((TM, o_pad), lambda i: (i, 0)),
        ),
        compiler_params=pltpu.CompilerParams(
            dimension_semantics=("parallel",),       # megacore sharding over batch
            vmem_limit_bytes=32 << 20,               # headroom on v7x (64 MiB phys)
        ),
    )(x_in, w1_p, b1_p, w2_p, b2_p)
    return out[:B, :out_features]


def init_params(key, output_size=OUTPUT_SIZE):
    k1, k2, k3, k4 = jax.random.split(key, 4)
    # PyTorch-Linear-like scaled uniform init (deterministic).
    lim1 = 1.0 / jnp.sqrt(IN_FEATURES)
    lim2 = 1.0 / jnp.sqrt(HIDDEN)
    w1 = jax.random.uniform(k1, (IN_FEATURES, HIDDEN), jnp.float32, -lim1, lim1)
    b1 = jax.random.uniform(k2, (HIDDEN,), jnp.float32, -lim1, lim1)
    w2 = jax.random.uniform(k3, (HIDDEN, output_size), jnp.float32, -lim2, lim2)
    b2 = jax.random.uniform(k4, (output_size,), jnp.float32, -lim2, lim2)
    return w1, b1, w2, b2


if __name__ == "__main__":
    key = jax.random.PRNGKey(0)
    kx, kp = jax.random.split(key)
    B = 64  # small, tile-aligned example batch; wrapper handles arbitrary B
    x = jax.random.normal(kx, (B, IN_FEATURES), jnp.float32)
    w1, b1, w2, b2 = init_params(kp, OUTPUT_SIZE)

    # One-time weight preparation (padding + bf16 cast) outside the hot path.
    w1_p, b1_p, w2_p, b2_p, out_features = prepare_params(w1, b1, w2, b2)

    out = neural_network_forward(x, w1_p, b1_p, w2_p, b2_p, out_features)
    out = jax.block_until_ready(out)
    assert out.shape == (B, OUTPUT_SIZE)

    # Reference with matching bf16 operand quantization + f32 accumulation.
    xq = x.astype(jnp.bfloat16).astype(jnp.float32)
    w1q = w1.astype(jnp.bfloat16).astype(jnp.float32)
    w2q = w2.astype(jnp.bfloat16).astype(jnp.float32)
    h_ref = jnp.maximum(xq @ w1q + b1[None, :], 0.0)
    ref = h_ref.astype(jnp.bfloat16).astype(jnp.float32) @ w2q + b2[None, :]
    assert jnp.allclose(out, ref, atol=2e-3, rtol=2e-3), \
        float(jnp.max(jnp.abs(out - ref)))

    # Loose sanity check against the all-f32 PyTorch-equivalent forward pass.
    ref_f32 = jnp.maximum(x @ w1 + b1[None, :], 0.0) @ w2 + b2[None, :]
    assert jnp.allclose(out, ref_f32, atol=1e-1, rtol=1e-1)

    print("KERNEL_OK")
</pallas_src>

<mosaic_0001>
module attributes {stable_mosaic.version = 11 : i64} {
  func.func @mlp_kernel(%arg0: i32, %arg1: memref<64x100xf32, #tpu.memory_space<vmem>>, %arg2: memref<100x1024xbf16, #tpu.memory_space<vmem>>, %arg3: memref<1x1024xf32, #tpu.memory_space<vmem>>, %arg4: memref<1024x128xbf16, #tpu.memory_space<vmem>>, %arg5: memref<1x128xf32, #tpu.memory_space<vmem>>, %arg6: memref<64x128xf32, #tpu.memory_space<vmem>>) attributes {dimension_semantics = [#tpu.dimension_semantics<parallel>], iteration_bounds = array<i64: 1>, scalar_prefetch = 0 : i64, scratch_operands = 0 : i64, tpu.core_type = #tpu.core_type<tc>, window_params = [{transform_indices = @transform_0, window_bounds = array<i64: 64, 100>}, {pipeline_mode = #tpu.pipeline_mode<synchronous>, transform_indices = @transform_1, window_bounds = array<i64: 100, 1024>}, {pipeline_mode = #tpu.pipeline_mode<synchronous>, transform_indices = @transform_2, window_bounds = array<i64: 1, 1024>}, {pipeline_mode = #tpu.pipeline_mode<synchronous>, transform_indices = @transform_3, window_bounds = array<i64: 1024, 128>}, {pipeline_mode = #tpu.pipeline_mode<synchronous>, transform_indices = @transform_4, window_bounds = array<i64: 1, 128>}, {transform_indices = @transform_5, window_bounds = array<i64: 64, 128>}]} {
    %c0 = arith.constant 0 : index
    %c0_0 = arith.constant 0 : index
    %0 = vector.load %arg1[%c0, %c0_0] : memref<64x100xf32, #tpu.memory_space<vmem>>, vector<64x100xf32>
    %1 = arith.truncf %0 : vector<64x100xf32> to vector<64x100xbf16>
    %c0_1 = arith.constant 0 : index
    %c0_2 = arith.constant 0 : index
    %2 = vector.load %arg2[%c0_1, %c0_2] : memref<100x1024xbf16, #tpu.memory_space<vmem>>, vector<100x1024xbf16>
    %cst = arith.constant dense<0.000000e+00> : vector<64x1024xf32>
    %3 = tpu.matmul %1, %2, %cst {dimension_numbers = #tpu.dot_dimension_numbers<[1], [0], [0], [1], [0, 0, 1, 1], [], []>} : vector<64x100xbf16>, vector<100x1024xbf16>, vector<64x1024xf32> -> vector<64x1024xf32>
    %c0_3 = arith.constant 0 : index
    %c0_4 = arith.constant 0 : index
    %4 = vector.load %arg3[%c0_3, %c0_4] : memref<1x1024xf32, #tpu.memory_space<vmem>>, vector<1x1024xf32>
    %5 = vector.broadcast %4 : vector<1x1024xf32> to vector<64x1024xf32>
    %6 = arith.addf %3, %5 : vector<64x1024xf32>
    %cst_5 = arith.constant 0.000000e+00 : f32
    %7 = vector.broadcast %cst_5 : f32 to vector<64x1024xf32>
    %8 = arith.maximumf %6, %7 : vector<64x1024xf32>
    %9 = arith.truncf %8 : vector<64x1024xf32> to vector<64x1024xbf16>
    %c0_6 = arith.constant 0 : index
    %c0_7 = arith.constant 0 : index
    %10 = vector.load %arg4[%c0_6, %c0_7] : memref<1024x128xbf16, #tpu.memory_space<vmem>>, vector<1024x128xbf16>
    %cst_8 = arith.constant dense<0.000000e+00> : vector<64x128xf32>
    %11 = tpu.matmul %9, %10, %cst_8 {dimension_numbers = #tpu.dot_dimension_numbers<[1], [0], [0], [1], [0, 0, 1, 1], [], []>} : vector<64x1024xbf16>, vector<1024x128xbf16>, vector<64x128xf32> -> vector<64x128xf32>
    %c0_9 = arith.constant 0 : index
    %c0_10 = arith.constant 0 : index
    %12 = vector.load %arg5[%c0_9, %c0_10] : memref<1x128xf32, #tpu.memory_space<vmem>>, vector<1x128xf32>
    %13 = vector.broadcast %12 : vector<1x128xf32> to vector<64x128xf32>
    %14 = arith.addf %11, %13 : vector<64x128xf32>
    %c0_11 = arith.constant 0 : index
    %c0_12 = arith.constant 0 : index
    %15 = vector.load %arg6[%c0_11, %c0_12] : memref<64x128xf32, #tpu.memory_space<vmem>>, vector<64x128xf32>
    tpu.vector_store %arg6[%c0_11, %c0_12], %14 {strides = array<i32>} : memref<64x128xf32, #tpu.memory_space<vmem>>, vector<64x128xf32>,
    return
  }
  func.func @transform_0(%arg0: i32) -> (i32, i32) {
    %c0_i32 = arith.constant 0 : i32
    %c0_i32_0 = arith.constant 0 : i32
    return %arg0, %c0_i32 : i32, i32
  }
  func.func @transform_1(%arg0: i32) -> (i32, i32) {
    %c0_i32 = arith.constant 0 : i32
    %c0_i32_0 = arith.constant 0 : i32
    %c0_i32_1 = arith.constant 0 : i32
    return %c0_i32, %c0_i32_0 : i32, i32
  }
  func.func @transform_2(%arg0: i32) -> (i32, i32) {
    %c0_i32 = arith.constant 0 : i32
    %c0_i32_0 = arith.constant 0 : i32
    %c0_i32_1 = arith.constant 0 : i32
    return %c0_i32, %c0_i32_0 : i32, i32
  }
  func.func @transform_3(%arg0: i32) -> (i32, i32) {
    %c0_i32 = arith.constant 0 : i32
    %c0_i32_0 = arith.constant 0 : i32
    %c0_i32_1 = arith.constant 0 : i32
    return %c0_i32, %c0_i32_0 : i32, i32
  }
  func.func @transform_4(%arg0: i32) -> (i32, i32) {
    %c0_i32 = arith.constant 0 : i32
    %c0_i32_0 = arith.constant 0 : i32
    %c0_i32_1 = arith.constant 0 : i32
    return %c0_i32, %c0_i32_0 : i32, i32
  }
  func.func @transform_5(%arg0: i32) -> (i32, i32) {
    %c0_i32 = arith.constant 0 : i32
    %c0_i32_0 = arith.constant 0 : i32
    return %arg0, %c0_i32 : i32, i32
  }
}

</mosaic_0001>

<bundles_post_ra>
// kernel: neural_network_forward.1
= control target key start
LH: loop header
LB: loop body
LE: loop exit
PB: predicated region body
PF: predicated region fallthrough
CT: control target
= control target key end

     0   :  { %10 = vsyncpa [#allocation3], 0  ;;  %s2420_s0 = inlined_call_operand.hbm [shape: f32[64,100], index: 0, kind: input, shape index: {}]   ;;  %s2421_s1 = inlined_call_operand.hbm [shape: bf16[100,1024], index: 1, kind: input, shape index: {}]   ;;  %s2422_s2 = inlined_call_operand.hbm [shape: f32[1,1024], index: 2, kind: input, shape index: {}]   ;;  %s2423_s3 = inlined_call_operand.hbm [shape: bf16[1024,128], index: 3, kind: input, shape index: {}]   ;;  %s2424_s4 = inlined_call_operand.vmem [shape: f32[1,128], index: 4, kind: input, shape index: {}]   ;;  %s2425_s5 = inlined_call_operand.vmem [shape: f32[64,128], index: 5, kind: output, shape index: {}]  }
   0x1   :  { %11 = vsyncpa [#allocation5], 0 }
   0x2   :  { %12 = vsyncpa [#allocation8], 0  ;;  %s2130_s18 = smov [#allocation4]  }
   0x3   :  { %s30_s19 = sshll.u32 %s2130_s18, 4  ;;  %s31_s19 = int_to_ptr.vmem [resolvable:$true] %s30_s19 }
   0x4   :  { %s2052_s20 = scalar_lea.vmem %s31_s19, 6656  ;;  %p2057_p1 = scmp.lt.s32.totalorder %s31_s19, %s31_s19 }
   0x5   :  { %p2053_p0 = scmp.ne.s32.totalorder %s31_s19, %s2052_s20  ;;  %p2058_p2 = scmp.lt.s32.totalorder %s2052_s20, %s2052_s20 }
   0x7   :  { %p2059_p3 = por %p2058_p2, %p2057_p1 }
   0x9   :  { %p2060_p4 = pnand %p2059_p3, %p2053_p0 }
   0xb   :  { %2063 = shalt.err (!%p2060_p4)
}
   0xc   :  { %s2131_s21 = smov 512   ;;  %s2132_s22 = smov 32  }
   0xd   :  { %36 = dma.hbm_to_vmem [thread:$0]  %s2421_s1, 6656, %s31_s19, [#allocation5], %s2131_s21, %s2131_s21, %s2132_s22  }
   0xe   :  { %s2133_s25 = smov [#allocation2]  }
   0xf   :  { %s18_s26 = sshll.u32 %s2133_s25, 4  ;;  %s19_s26 = int_to_ptr.vmem [resolvable:$true] %s18_s26 }
  0x10   :  { %s2072_s27 = scalar_lea.vmem %s19_s26, 1024  ;;  %p2077_p6 = scmp.lt.s32.totalorder %s19_s26, %s19_s26 }
  0x11   :  { %p2073_p5 = scmp.ne.s32.totalorder %s19_s26, %s2072_s27  ;;  %p2078_p7 = scmp.lt.s32.totalorder %s2072_s27, %s2072_s27 }
  0x13   :  { %p2079_p8 = por %p2078_p7, %p2077_p6 }
  0x15   :  { %p2080_p9 = pnand %p2079_p8, %p2073_p5 }
  0x17   :  { %2083 = shalt.err (!%p2080_p9)
}
  0x18   :  { %s2134_s28 = smov 128   ;;  %s2135_s29 = smov 8  }
  0x19   :  { %24 = dma.hbm_to_vmem [thread:$0]  %s2420_s0, 1024, %s19_s26, [#allocation3], %s2134_s28, %s2134_s28, %s2135_s29  }
  0x1a   :  { %s2136_s7 = smov [#allocation6]   ;;  %s2137_s9 = smov [#allocation7]  }
  0x1b   :  { %s43_s8 = sshll.u32 %s2136_s7, 4  ;;  %s52_s1 = sshll.u32 %s2137_s9, 4  ;;  %s44_s8 = int_to_ptr.vmem [resolvable:$true] %s43_s8  ;;  %s53_s1 = int_to_ptr.vmem [resolvable:$true] %s52_s1 }
  0x1c   :  { %s2092_s10 = scalar_lea.vmem %s44_s8, 128  ;;  %p2097_p11 = scmp.lt.s32.totalorder %s44_s8, %s44_s8 }
  0x1d   :  { %p2093_p10 = scmp.ne.s32.totalorder %s44_s8, %s2092_s10  ;;  %p2098_p12 = scmp.lt.s32.totalorder %s2092_s10, %s2092_s10 }
  0x1f   :  { %p2099_p13 = por %p2098_p12, %p2097_p11 }
  0x21   :  { %p2100_p0 = pnand %p2099_p13, %p2093_p10 }
  0x23   :  { %2103 = shalt.err (!%p2100_p0)
}
  0x24   :  { %46 = dma.hbm_to_vmem [thread:$0]  %s2422_s2, 128, %s44_s8, [#allocation5]  }
  0x25   :  { %s2112_s13 = scalar_lea.vmem %s53_s1, 8192  ;;  %p2117_p2 = scmp.lt.s32.totalorder %s53_s1, %s53_s1 }
  0x26   :  { %p2113_p1 = scmp.ne.s32.totalorder %s53_s1, %s2112_s13  ;;  %p2118_p3 = scmp.lt.s32.totalorder %s2112_s13, %s2112_s13 }
  0x28   :  { %p2119_p4 = por %p2118_p3, %p2117_p2 }
  0x2a   :  { %p2120_p5 = pnand %p2119_p4, %p2113_p1 }
  0x2c   :  { %2123 = shalt.err (!%p2120_p5)
}
  0x2d   :  { %s2138_s0 = smov 64   ;;  %s2139_s14 = smov 4  }
  0x2e   :  { %58 = dma.hbm_to_vmem [thread:$0]  %s2423_s3, 8192, %s53_s1, [#allocation8], %s2138_s0, %s2138_s0, %s2139_s14  }
  0x2f   :  { %2124 = dma.done.wait [#allocation3], 1024  }
  0x30   :  { %2125 = vsyncadd [#allocation3], 4294966272 }
  0x31   :  { %2126 = dma.done.wait [#allocation5], 6784  }
  0x32   :  { %2127 = vsyncadd [#allocation5], 4294960512 }
  0x33   :  { %2128 = dma.done.wait [#allocation8], 8192  }
  0x34   :  { %2129 = vsyncadd [#allocation8], 4294959104  ;;  %v2140_v0 = vmov 0   ;;  %v134_v1 = vld [vmem:[#allocation4 + $0x180] sm:$0x33]  ;;  %vm453_vm0 = vcmask 1041408  }
  0x35   :  { %510 = vmatprep.mubr.bf16.mxu0 %v2140_v0  ;;  %583 = vmatprep.mubr.bf16.mxu1 %v2140_v0  ;;  %v135_v2 = vld [vmem:[#allocation4 + $0x188] sm:$0x33]  ;;  %v126_v3 = vld [vmem:[#allocation4 + $0x140] sm:$0xff]  ;;  %v1709_v4 = vcombine.high %v134_v1, %v134_v1  ;;  %v1708_v6 = vcombine.low %v134_v1, %v134_v1  ;;  %v136_v55 = vld [vmem:[#allocation4 + $0x190] sm:$0x33]  ;;  %vm440_vm1 = vcmask 818176  }
  0x36   :  { %v1711_v5 = vcombine.high %v135_v2, %v135_v2  ;;  %v1710_v7 = vcombine.low %v135_v2, %v135_v2  ;;  %v130_v8 = vld [vmem:[#allocation4 + $0x160] sm:$0xff]  ;;  %v127_v9 = vld [vmem:[#allocation4 + $0x148] sm:$0xff]  ;;  %v137_v57 = vld [vmem:[#allocation4 + $0x198] sm:$0x33]  ;;  %v1712_v61 = vcombine.low %v136_v55, %v136_v55  ;;  %v1713_v63 = vcombine.high %v136_v55, %v136_v55 }
  0x37   :  { %v131_v10 = vld [vmem:[#allocation4 + $0x168] sm:$0xff]  ;;  %v1701_v11 = vcombine.high %v126_v3, %v130_v8  ;;  %v118_v13 = vld [vmem:[#allocation4 + $0x100] sm:$0xff]  ;;  %1716 = vmatprep.subr.msk.bf16.mxu0 %vm453_vm0, %v1709_v4  ;;  %v455_v16 = vsel %vm453_vm0, %v1708_v6, 0  ;;  %v1700_v19 = vcombine.low %v126_v3, %v130_v8  ;;  %v128_v62 = vld [vmem:[#allocation4 + $0x150] sm:$0xff]  ;;  %v1715_v1 = vcombine.high %v137_v57, %v137_v57 }
  0x38   :  { %v1703_v12 = vcombine.high %v127_v9, %v131_v10  ;;  %v122_v14 = vld [vmem:[#allocation4 + $0x120] sm:$0xff]  ;;  %v119_v15 = vld [vmem:[#allocation4 + $0x108] sm:$0xff]  ;;  %1721 = vmatprep.subr.msk.bf16.mxu1 %vm453_vm0, %v1711_v5  ;;  %v461_v17 = vsel %vm453_vm0, %v1710_v7, 0  ;;  %481 = vmatpush1.bf16.msra.mxu0 %v455_v16  ;;  %v1702_v20 = vcombine.low %v127_v9, %v131_v10  ;;  %v1714_v2 = vcombine.low %v137_v57, %v137_v57  ;;  %v132_v3 = vld [vmem:[#allocation4 + $0x170] sm:$0xff] }
  0x39   :  { %v123_v18 = vld [vmem:[#allocation4 + $0x128] sm:$0xff]  ;;  %554 = vmatpush1.bf16.msra.mxu1 %v461_v17  ;;  %482 = vmatprep.subr.bf16.mxu0 %v1701_v11  ;;  %v1693_v21 = vcombine.high %v118_v13, %v122_v14  ;;  %v110_v23 = vld [vmem:[#allocation4 + $0xc0] sm:$0xff]  ;;  %v1692_v27 = vcombine.low %v118_v13, %v122_v14  ;;  %v129_v4 = vld [vmem:[#allocation4 + $0x158] sm:$0xff]  ;;  %v467_v7 = vsel %vm453_vm0, %v1712_v61, 0  ;;  %v1705_v11 = vcombine.high %v128_v62, %v132_v3 }
  0x3a   :  { %555 = vmatprep.subr.bf16.mxu1 %v1703_v12  ;;  %v1695_v22 = vcombine.high %v119_v15, %v123_v18  ;;  %v114_v24 = vld [vmem:[#allocation4 + $0xe0] sm:$0xff]  ;;  %v111_v25 = vld [vmem:[#allocation4 + $0xc8] sm:$0xff]  ;;  %v1694_v28 = vcombine.low %v119_v15, %v123_v18  ;;  %v133_v6 = vld [vmem:[#allocation4 + $0x178] sm:$0xff]  ;;  %v473_v10 = vsel %vm453_vm0, %v1714_v2, 0  ;;  %v1704_v17 = vcombine.low %v128_v62, %v132_v3 }
  0x3b   :  { %v115_v26 = vld [vmem:[#allocation4 + $0xe8] sm:$0xff]  ;;  %v1685_v29 = vcombine.high %v110_v23, %v114_v24  ;;  %v102_v31 = vld [vmem:[#allocation4 + $0x80] sm:$0xff]  ;;  %v1684_v35 = vcombine.low %v110_v23, %v114_v24  ;;  %v120_v8 = vld [vmem:[#allocation4 + $0x110] sm:$0xff]  ;;  %v1707_v13 = vcombine.high %v129_v4, %v133_v6  ;;  %v1706_v18 = vcombine.low %v129_v4, %v133_v6 }
  0x3c   :  { %483 = vmatpush1.bf16.msra.mxu0 %v1700_v19  ;;  %v1687_v30 = vcombine.high %v111_v25, %v115_v26  ;;  %v106_v32 = vld [vmem:[#allocation4 + $0xa0] sm:$0xff]  ;;  %v103_v33 = vld [vmem:[#allocation4 + $0x88] sm:$0xff]  ;;  %v1686_v36 = vcombine.low %v111_v25, %v115_v26  ;;  %v124_v9 = vld [vmem:[#allocation4 + $0x130] sm:$0xff] }
  0x3d   :  { %556 = vmatpush1.bf16.msra.mxu1 %v1702_v20  ;;  %484 = vmatprep.subr.bf16.mxu0 %v1693_v21  ;;  %v107_v34 = vld [vmem:[#allocation4 + $0xa8] sm:$0xff]  ;;  %v1677_v37 = vcombine.high %v102_v31, %v106_v32  ;;  %v94_v39 = vld [vmem:[#allocation4 + $0x40] sm:$0xff]  ;;  %v1676_v43 = vcombine.low %v102_v31, %v106_v32  ;;  %v121_v12 = vld [vmem:[#allocation4 + $0x118] sm:$0xff]  ;;  %v1697_v20 = vcombine.high %v120_v8, %v124_v9 }
  0x3e   :  { %557 = vmatprep.subr.bf16.mxu1 %v1695_v22  ;;  %v1679_v38 = vcombine.high %v103_v33, %v107_v34  ;;  %v98_v40 = vld [vmem:[#allocation4 + $0x60] sm:$0xff]  ;;  %v95_v41 = vld [vmem:[#allocation4 + $0x48] sm:$0xff]  ;;  %v1678_v44 = vcombine.low %v103_v33, %v107_v34  ;;  %v76_v14 = vld [vmem:[#allocation2 + $0x10] sm:$0xff]  ;;  %v1696_v26 = vcombine.low %v120_v8, %v124_v9 }
  0x3f   :  { %v99_v42 = vld [vmem:[#allocation4 + $0x68] sm:$0xff]  ;;  %v1669_v45 = vcombine.high %v94_v39, %v98_v40  ;;  %v86_v47 = vld [vmem:[#allocation4] sm:$0xff]  ;;  %v1668_v51 = vcombine.low %v94_v39, %v98_v40  ;;  %v125_v15 = vld [vmem:[#allocation4 + $0x138] sm:$0xff] }
  0x40   :  { %485 = vmatpush1.bf16.msra.mxu0 %v1692_v27  ;;  %v1671_v46 = vcombine.high %v95_v41, %v99_v42  ;;  %v90_v48 = vld [vmem:[#allocation4 + $0x20] sm:$0xff]  ;;  %v87_v49 = vld [vmem:[#allocation4 + $0x8] sm:$0xff]  ;;  %v1670_v52 = vcombine.low %v95_v41, %v99_v42  ;;  %v77_v16 = vld [vmem:[#allocation2 + $0x18] sm:$0xff]  ;;  %v1699_v21 = vcombine.high %v121_v12, %v125_v15  ;;  %v1698_v27 = vcombine.low %v121_v12, %v125_v15 }
  0x41   :  { %558 = vmatpush1.bf16.msra.mxu1 %v1694_v28  ;;  %486 = vmatprep.subr.bf16.mxu0 %v1685_v29  ;;  %v91_v50 = vld [vmem:[#allocation4 + $0x28] sm:$0xff]  ;;  %v1661_v53 = vcombine.high %v86_v47, %v90_v48  ;;  %v74_v56 = vld [vmem:[#allocation2] sm:$0xff]  ;;  %v1660_v59 = vcombine.low %v86_v47, %v90_v48  ;;  %v112_v19 = vld [vmem:[#allocation4 + $0xd0] sm:$0xff]  ;;  %v2201_v24 = vpack.c.bf16 %v77_v16, %v76_v14 }
  0x42   :  { %559 = vmatprep.subr.bf16.mxu1 %v1687_v30  ;;  %v1663_v54 = vcombine.high %v87_v49, %v91_v50  ;;  %v75_v58 = vld [vmem:[#allocation2 + $0x8] sm:$0xff]  ;;  %v1662_v60 = vcombine.low %v87_v49, %v91_v50  ;;  %v116_v22 = vld [vmem:[#allocation4 + $0xf0] sm:$0xff]  ;;  %v113_v23 = vld [vmem:[#allocation4 + $0xd8] sm:$0xff] }
  0x43   :  { %v2189_v5 = vpack.c.bf16 %v75_v58, %v74_v56  ;;  %v117_v25 = vld [vmem:[#allocation4 + $0xf8] sm:$0xff]  ;;  %v104_v28 = vld [vmem:[#allocation4 + $0x90] sm:$0xff]  ;;  %v1689_v30 = vcombine.high %v112_v19, %v116_v22  ;;  %v78_v34 = vld [vmem:[#allocation2 + $0x20] sm:$0xff] }
  0x44   :  { %487 = vmatpush1.bf16.msra.mxu0 %v1684_v35  ;;  %v108_v29 = vld [vmem:[#allocation4 + $0xb0] sm:$0xff]  ;;  %v105_v31 = vld [vmem:[#allocation4 + $0x98] sm:$0xff]  ;;  %v1691_v32 = vcombine.high %v113_v23, %v117_v25  ;;  %v1688_v35 = vcombine.low %v112_v19, %v116_v22  ;;  %v1980_v62 = vld [vmem:[#allocation7 + $0x78] sm:$0xff]  }
  0x45   :  { %560 = vmatpush1.bf16.msra.mxu1 %v1686_v36  ;;  %488 = vmatprep.subr.bf16.mxu0 %v1677_v37  ;;  %v109_v33 = vld [vmem:[#allocation4 + $0xb8] sm:$0xff]  ;;  %v79_v36 = vld [vmem:[#allocation2 + $0x28] sm:$0xff]  ;;  %v1690_v37 = vcombine.low %v113_v23, %v117_v25  ;;  %v96_v40 = vld [vmem:[#allocation4 + $0x50] sm:$0xff] }
  0x46   :  { %561 = vmatprep.subr.bf16.mxu1 %v1679_v38  ;;  %v1681_v38 = vcombine.high %v104_v28, %v108_v29  ;;  %v1683_v39 = vcombine.high %v105_v31, %v109_v33  ;;  %v100_v41 = vld [vmem:[#allocation4 + $0x70] sm:$0xff]  ;;  %v97_v42 = vld [vmem:[#allocation4 + $0x58] sm:$0xff]  ;;  %v1983_v2 = vld [vmem:[#allocation7 + $0xb8] sm:$0xff]  }
  0x47   :  { %v88_v47 = vld [vmem:[#allocation4 + $0x10] sm:$0xff]  ;;  %v89_v49 = vld [vmem:[#allocation4 + $0x18] sm:$0xff]  ;;  %v1672_v55 = vcombine.low %v96_v40, %v100_v41  ;;  %v1992_v12 = vld [vmem:[#allocation7 + $0x60] sm:$0xff]  }
  0x48   :  { %489 = vmatpush1.bf16.msra.mxu0 %v1676_v43  ;;  %v101_v43 = vld [vmem:[#allocation4 + $0x78] sm:$0xff]  ;;  %v92_v48 = vld [vmem:[#allocation4 + $0x30] sm:$0xff]  ;;  %v1995_v14 = vld [vmem:[#allocation7 + $0xa0] sm:$0xff]  }
  0x49   :  { %562 = vmatpush1.bf16.msra.mxu1 %v1678_v44  ;;  %490 = vmatprep.subr.bf16.mxu0 %v1669_v45  ;;  %v2209_v44 = vpack.c.bf16 %v79_v36, %v78_v34  ;;  %v1680_v45 = vcombine.low %v104_v28, %v108_v29  ;;  %v93_v50 = vld [vmem:[#allocation4 + $0x38] sm:$0xff]  ;;  %v1674_v56 = vcombine.low %v97_v42, %v101_v43  ;;  %v1988_v8 = vld [vmem:[#allocation7 + $0x68] sm:$0xff]   ;;  %v1996_v15 = vld [vmem:[#allocation7 + $0x58] sm:$0xff]  }
  0x4a   :  { %563 = vmatprep.subr.bf16.mxu1 %v1671_v46  ;;  %v1682_v46 = vcombine.low %v105_v31, %v109_v33  ;;  %v1665_v57 = vcombine.high %v88_v47, %v92_v48  ;;  %v1667_v58 = vcombine.high %v89_v49, %v93_v50  ;;  %v1666_v61 = vcombine.low %v89_v49, %v93_v50  ;;  %v1984_v3 = vld [vmem:[#allocation7 + $0x70] sm:$0xff]   ;;  %v1989_v9 = vld [vmem:[#allocation7 + $0xe8] sm:$0xff]   ;;  %v1997_v16 = vld [vmem:[#allocation7 + $0xd8] sm:$0xff]  }
  0x4b   :  { %v1985_v4 = vld [vmem:[#allocation7 + $0xf0] sm:$0xff]   ;;  %v2004_v23 = vld [vmem:[#allocation7 + $0x48] sm:$0xff]   ;;  %v2010_v28 = vld [vmem:[#allocation7] sm:$0xff]  }
  0x4c   :  { %491 = vmatpush1.bf16.msra.mxu0 %v1668_v51  ;;  %v1673_v51 = vcombine.high %v96_v40, %v100_v41  ;;  %v1986_v6 = vld [vmem:[#allocation7 + $0x30] sm:$0xff]   ;;  %v2006_v25 = vld [vmem:[#allocation7 + $0x8] sm:$0xff]   ;;  %v2011_v29 = vld [vmem:[#allocation7 + $0x80] sm:$0xff]  }
  0x4d   :  { %564 = vmatpush1.bf16.msra.mxu1 %v1670_v52  ;;  %492 = vmatprep.subr.bf16.mxu0 %v1661_v53  ;;  %v80_v52 = vld [vmem:[#allocation2 + $0x30] sm:$0xff]  ;;  %v81_v53 = vld [vmem:[#allocation2 + $0x38] sm:$0xff]  ;;  %v2013_v31 = vld [vmem:[#allocation7 + $0x1f8] sm:$0xff]  }
  0x4e   :  { %565 = vmatprep.subr.bf16.mxu1 %v1663_v54  ;;  %v1675_v54 = vcombine.high %v97_v42, %v101_v43  ;;  %v2000_v19 = vld [vmem:[#allocation7 + $0x50] sm:$0xff]  }
  0x4f   :  { %v2003_v22 = vld [vmem:[#allocation7 + $0x90] sm:$0xff]  }
  0x50   :  { %493 = vmatpush1.bf16.msra.mxu0 %v1660_v59  ;;  %v2217_v59 = vpack.c.bf16 %v81_v53, %v80_v52 }
  0x51   :  { %566 = vmatpush1.bf16.msra.mxu1 %v1662_v60  ;;  %1726 = vmatprep.subr.msk.bf16.mxu0 %vm453_vm0, %v1713_v63  ;;  %v1664_v60 = vcombine.low %v88_v47, %v92_v48  ;;  %v1981_v63 = vld [vmem:[#allocation7 + $0xf8] sm:$0xff]  }
  0x52   :  { %1731 = vmatprep.subr.msk.bf16.mxu1 %vm453_vm0, %v1715_v1  ;;  %v1982_v1 = vld [vmem:[#allocation7 + $0x38] sm:$0xff]  }
  0x53   :  { %1717 = vmatmul.mubr.msk.bf16.vlgmr.msra.gmra.mxu0 %vm440_vm1, %v2189_v5 }
  0x54   :  { %1722 = vmatmul.mubr.msk.bf16.vlgmr.msra.gmra.mxu1 %vm440_vm1, %v2189_v5  ;;  %627 = vmatpush1.bf16.msra.mxu0 %v467_v7  ;;  %v1987_v7 = vld [vmem:[#allocation7 + $0xb0] sm:$0xff]  }
  0x55   :  { %700 = vmatpush1.bf16.msra.mxu1 %v473_v10  ;;  %628 = vmatprep.subr.bf16.mxu0 %v1705_v11  ;;  %v1990_v10 = vld [vmem:[#allocation7 + $0x28] sm:$0xff]  }
  0x56   :  { %520 = vmatprep.mubr.bf16.mxu0 %v2140_v0  ;;  %593 = vmatprep.mubr.bf16.mxu1 %v2140_v0  ;;  %v1991_v11 = vld [vmem:[#allocation7 + $0xa8] sm:$0xff]  }
  0x57   :  { %701 = vmatprep.subr.bf16.mxu1 %v1707_v13  ;;  %v1994_v13 = vld [vmem:[#allocation7 + $0x20] sm:$0xff]  }
  0x58   :  { %629 = vmatpush1.bf16.msra.mxu0 %v1704_v17  ;;  %v1998_v17 = vld [vmem:[#allocation7 + $0x18] sm:$0xff]  }
  0x59   :  { %702 = vmatpush1.bf16.msra.mxu1 %v1706_v18  ;;  %630 = vmatprep.subr.bf16.mxu0 %v1697_v20  ;;  %v1999_v18 = vld [vmem:[#allocation7 + $0x98] sm:$0xff]   ;;  %v2001_v20 = vld [vmem:[#allocation7 + $0xd0] sm:$0xff]  }
  0x5a   :  { %703 = vmatprep.subr.bf16.mxu1 %v1699_v21  ;;  %v2002_v21 = vld [vmem:[#allocation7 + $0x10] sm:$0xff]  }
  0x5b   :  { %1718 = vmatmul.mubr.msk.bf16.gmra.mxu0 %vm440_vm1, %v2201_v24 }
  0x5c   :  { %1723 = vmatmul.mubr.msk.bf16.gmra.mxu1 %vm440_vm1, %v2201_v24  ;;  %631 = vmatpush1.bf16.msra.mxu0 %v1696_v26  ;;  %v2008_v26 = vld [vmem:[#allocation7 + $0x40] sm:$0xff]  }
  0x5d   :  { %704 = vmatpush1.bf16.msra.mxu1 %v1698_v27  ;;  %632 = vmatprep.subr.bf16.mxu0 %v1689_v30  ;;  %v2009_v27 = vld [vmem:[#allocation7 + $0xc0] sm:$0xff]   ;;  %v2012_v30 = vld [vmem:[#allocation7 + $0x178] sm:$0xff]  }
  0x5e   :  { %530 = vmatprep.mubr.bf16.mxu0 %v2140_v0  ;;  %603 = vmatprep.mubr.bf16.mxu1 %v2140_v0 }
  0x5f   :  { %705 = vmatprep.subr.bf16.mxu1 %v1691_v32  ;;  %v140_v32 = vlaneseq }
  0x60   :  { %633 = vmatpush1.bf16.msra.mxu0 %v1688_v35 }
  0x61   :  { %706 = vmatpush1.bf16.msra.mxu1 %v1690_v37  ;;  %634 = vmatprep.subr.bf16.mxu0 %v1681_v38  ;;  %v2247_v33 = vshrl.u32 %v140_v32, 7  ;;  %v2253_v38 = vld [vmem:[#allocation6] sm:$0xff]  ;;  %v2019_v32 = vld [vmem:[#allocation7 + $0x1b0] sm:$0xff]  }
  0x62   :  { %707 = vmatprep.subr.bf16.mxu1 %v1683_v39 }
  0x63   :  { %1719 = vmatmul.mubr.msk.bf16.gmra.mxu0 %vm440_vm1, %v2209_v44  ;;  %v146_v34 = vsub.s32 1, %v2247_v33  ;;  %v154_v35 = vsub.s32 3, %v2247_v33  ;;  %v142_v36 = vsub.s32 0, %v2247_v33  ;;  %v150_v37 = vsub.s32 2, %v2247_v33 }
  0x64   :  { %1724 = vmatmul.mubr.msk.bf16.gmra.mxu1 %vm440_vm1, %v2209_v44  ;;  %635 = vmatpush1.bf16.msra.mxu0 %v1680_v45 }
  0x65   :  { %708 = vmatpush1.bf16.msra.mxu1 %v1682_v46  ;;  %540 = vmatprep.mubr.bf16.mxu0 %v2140_v0  ;;  %v2256_v41 = vrot.slane %v2253_v38, %v146_v34  ;;  %v2259_v42 = vrot.slane %v2253_v38, %v154_v35  ;;  %v2262_v43 = vrot.slane %v2253_v38, %v142_v36  ;;  %v2020_v34 = vld [vmem:[#allocation7 + $0x168] sm:$0xff]  }
  0x66   :  { %613 = vmatprep.mubr.bf16.mxu1 %v2140_v0  ;;  %636 = vmatprep.subr.bf16.mxu0 %v1673_v51 }
  0x67   :  { %709 = vmatprep.subr.bf16.mxu1 %v1675_v54 }
  0x68   :  { %637 = vmatpush1.bf16.msra.mxu0 %v1672_v55 }
  0x69   :  { %710 = vmatpush1.bf16.msra.mxu1 %v1674_v56  ;;  %638 = vmatprep.subr.bf16.mxu0 %v1665_v57 }
  0x6a   :  { %711 = vmatprep.subr.bf16.mxu1 %v1667_v58 }
  0x6b   :  { %1720 = vmatmul.mubr.msk.bf16.gmra.mxu0 %vm440_vm1, %v2217_v59 }
  0x6c   :  { %1725 = vmatmul.mubr.msk.bf16.gmra.mxu1 %vm440_vm1, %v2217_v59  ;;  %639 = vmatpush1.bf16.msra.mxu0 %v1664_v60 }
  0x6d   :  { %712 = vmatpush1.bf16.msra.mxu1 %v1666_v61  ;;  %656 = vmatprep.mubr.bf16.mxu0 %v2140_v0 }
  0x6e   :  { %729 = vmatprep.mubr.bf16.mxu1 %v2140_v0  ;;  %1801 = vmatprep.subr.bf16.mxu0 %v1980_v62 }
  0x6f   :  { %1841 = vmatprep.subr.bf16.mxu1 %v1981_v63 }
  0x73   :  { %1727 = vmatmul.mubr.msk.bf16.vlgmr.msra.gmra.mxu0 %vm440_vm1, %v2189_v5 }
  0x74   :  { %1732 = vmatmul.mubr.msk.bf16.vlgmr.msra.gmra.mxu1 %vm440_vm1, %v2189_v5  ;;  %666 = vmatprep.mubr.bf16.mxu0 %v2140_v0  ;;  %v1993_v5 = vld [vmem:[#allocation7 + $0xe0] sm:$0xff]  }
  0x75   :  { %739 = vmatprep.mubr.bf16.mxu1 %v2140_v0  ;;  %1802 = vmatpush3.bf16.msra.mxu0 %v1982_v1 }
  0x76   :  { %1842 = vmatpush3.bf16.msra.mxu1 %v1983_v2  ;;  %1803 = vmatprep.subr.bf16.mxu0 %v1984_v3 }
  0x77   :  { %1843 = vmatprep.subr.bf16.mxu1 %v1985_v4 }
  0x79   :  { %1804 = vmatpush3.bf16.msra.mxu0 %v1986_v6 }
  0x7a   :  { %1844 = vmatpush3.bf16.msra.mxu1 %v1987_v7  ;;  %1805 = vmatprep.subr.bf16.mxu0 %v1988_v8 }
  0x7b   :  { %1845 = vmatprep.subr.bf16.mxu1 %v1989_v9  ;;  %1728 = vmatmul.mubr.msk.bf16.gmra.mxu0 %vm440_vm1, %v2201_v24 }
  0x7c   :  { %1733 = vmatmul.mubr.msk.bf16.gmra.mxu1 %vm440_vm1, %v2201_v24  ;;  %676 = vmatprep.mubr.bf16.mxu0 %v2140_v0  ;;  %v2005_v24 = vld [vmem:[#allocation7 + $0xc8] sm:$0xff]  }
  0x7d   :  { %749 = vmatprep.mubr.bf16.mxu1 %v2140_v0  ;;  %1806 = vmatpush3.bf16.msra.mxu0 %v1990_v10 }
  0x7e   :  { %1846 = vmatpush3.bf16.msra.mxu1 %v1991_v11  ;;  %1807 = vmatprep.subr.bf16.mxu0 %v1992_v12  ;;  %v2014_v11 = vld [vmem:[#allocation7 + $0x138] sm:$0xff]  }
  0x7f   :  { %1847 = vmatprep.subr.bf16.mxu1 %v1993_v5  ;;  %v2015_v12 = vld [vmem:[#allocation7 + $0x1b8] sm:$0xff]  }
  0x81   :  { %1808 = vmatpush3.bf16.msra.mxu0 %v1994_v13 }
  0x82   :  { %1848 = vmatpush3.bf16.msra.mxu1 %v1995_v14  ;;  %1809 = vmatprep.subr.bf16.mxu0 %v1996_v15 }
  0x83   :  { %1849 = vmatprep.subr.bf16.mxu1 %v1997_v16  ;;  %1729 = vmatmul.mubr.msk.bf16.gmra.mxu0 %vm440_vm1, %v2209_v44 }
  0x84   :  { %1734 = vmatmul.mubr.msk.bf16.gmra.mxu1 %vm440_vm1, %v2209_v44  ;;  %686 = vmatprep.mubr.bf16.mxu0 %v2140_v0  ;;  %v2265_v44 = vrot.slane %v2253_v38, %v150_v37 }
  0x85   :  { %759 = vmatprep.mubr.bf16.mxu1 %v2140_v0  ;;  %1810 = vmatpush3.bf16.msra.mxu0 %v1998_v17  ;;  %v2007_v0 = vld [vmem:[#allocation7 + $0x88] sm:$0xff]   ;;  %v2016_v17 = vld [vmem:[#allocation7 + $0x170] sm:$0xff]  }
  0x86   :  { %1850 = vmatpush3.bf16.msra.mxu1 %v1999_v18  ;;  %1811 = vmatprep.subr.bf16.mxu0 %v2000_v19  ;;  %v2017_v18 = vld [vmem:[#allocation7 + $0x1f0] sm:$0xff]  }
  0x87   :  { %1851 = vmatprep.subr.bf16.mxu1 %v2001_v20 }
  0x89   :  { %1812 = vmatpush3.bf16.msra.mxu0 %v2002_v21 }
  0x8a   :  { %1852 = vmatpush3.bf16.msra.mxu1 %v2003_v22  ;;  %1813 = vmatprep.subr.bf16.mxu0 %v2004_v23 }
  0x8b   :  { %1730 = vmatmul.mubr.msk.bf16.gmra.mxu0 %vm440_vm1, %v2217_v59  ;;  %1853 = vmatprep.subr.bf16.mxu1 %v2005_v24 }
  0x8c   :  { %1735 = vmatmul.mubr.msk.bf16.gmra.mxu1 %vm440_vm1, %v2217_v59 }
  0x8d   :  { %1814 = vmatpush3.bf16.msra.mxu0 %v2006_v25 }
  0x8e   :  { %1854 = vmatpush3.bf16.msra.mxu1 %v2007_v0  ;;  %1815 = vmatprep.subr.bf16.mxu0 %v2008_v26 }
  0x8f   :  { %1855 = vmatprep.subr.bf16.mxu1 %v2009_v27  ;;  %v2018_v27 = vld [vmem:[#allocation7 + $0x130] sm:$0xff]  }
  0x91   :  { %1816 = vmatpush3.bf16.msra.mxu0 %v2010_v28 }
  0x92   :  { %1856 = vmatpush3.bf16.msra.mxu1 %v2011_v29  ;;  %1881 = vmatprep.subr.bf16.mxu0 %v2012_v30 }
  0x93   :  { %1921 = vmatprep.subr.bf16.mxu1 %v2013_v31 }
 0x113   :  { %v512_v39 = vpop.f32.mrf.mxu0 }
 0x114   :  { %v585_v40 = vpop.f32.mrf.mxu1  ;;  %v513_v53 = vadd.f32 %v512_v39, %v2262_v43 }
 0x115   :  { %v514_v45 = vpop.f32.mrf.mxu0  ;;  %v586_v54 = vadd.f32 %v585_v40, %v2265_v44 }
 0x116   :  { %v587_v46 = vpop.f32.mrf.mxu1  ;;  %v515_v49 = vadd.f32 %v514_v45, %v2256_v41  ;;  %v770_v4 = vmax.f32 %v513_v53, 0.0 }
 0x117   :  { %v516_v47 = vpop.f32.mrf.mxu0  ;;  %v588_v50 = vadd.f32 %v587_v46, %v2259_v42  ;;  %v772_v6 = vmax.f32 %v586_v54, 0.0 }
 0x118   :  { %v589_v48 = vpop.f32.mrf.mxu1  ;;  %v517_v51 = vadd.f32 %v516_v47, %v2262_v43  ;;  %v771_v63 = vmax.f32 %v515_v49, 0.0 }
 0x119   :  { %v590_v52 = vadd.f32 %v589_v48, %v2265_v44  ;;  %v518_v55 = vpop.f32.mrf.mxu0  ;;  %v773_v1 = vmax.f32 %v588_v50, 0.0  ;;  %v2021_v50 = vld [vmem:[#allocation7 + $0x1e8] sm:$0xff]  }
 0x11a   :  { %v591_v56 = vpop.f32.mrf.mxu1  ;;  %v519_v57 = vadd.f32 %v518_v55, %v2256_v41  ;;  %v778_v59 = vmax.f32 %v517_v51, 0.0  ;;  %v2022_v51 = vld [vmem:[#allocation7 + $0x128] sm:$0xff]  }
 0x11b   :  { %v592_v58 = vadd.f32 %v591_v56, %v2259_v42  ;;  %v780_v60 = vmax.f32 %v590_v52, 0.0  ;;  %v522_v61 = vpop.f32.mrf.mxu0 }
 0x11c   :  { %v595_v62 = vpop.f32.mrf.mxu1  ;;  %v779_v2 = vmax.f32 %v519_v57, 0.0  ;;  %v834_v5 = vpack.c.bf16 %v778_v59, %v770_v4  ;;  %v523_v22 = vadd.f32 %v522_v61, %v2262_v43  ;;  %v2023_v57 = vld [vmem:[#allocation7 + $0x1a8] sm:$0xff]  }
 0x11d   :  { %v781_v3 = vmax.f32 %v592_v58, 0.0  ;;  %v524_v7 = vpop.f32.mrf.mxu0  ;;  %v836_v13 = vpack.c.bf16 %v780_v60, %v772_v6  ;;  %v596_v23 = vadd.f32 %v595_v62, %v2265_v44  ;;  %v2024_v58 = vld [vmem:[#allocation7 + $0x160] sm:$0xff]  }
 0x11e   :  { %v597_v8 = vpop.f32.mrf.mxu1  ;;  %v835_v9 = vpack.c.bf16 %v779_v2, %v771_v63  ;;  %v525_v14 = vadd.f32 %v524_v7, %v2256_v41  ;;  %v786_v40 = vmax.f32 %v523_v22, 0.0  ;;  %v2025_v62 = vld [vmem:[#allocation7 + $0x1e0] sm:$0xff]  }
 0x11f   :  { %v837_v10 = vpack.c.bf16 %v781_v3, %v773_v1  ;;  %v526_v15 = vpop.f32.mrf.mxu0  ;;  %v598_v19 = vadd.f32 %v597_v8, %v2259_v42  ;;  %v788_v45 = vmax.f32 %v596_v23, 0.0  ;;  %v2026_v7 = vld [vmem:[#allocation7 + $0x120] sm:$0xff]   ;;  %v2029_v23 = vld [vmem:[#allocation7 + $0x1d8] sm:$0xff]  }
 0x120   :  { %v599_v16 = vpop.f32.mrf.mxu1  ;;  %v527_v20 = vadd.f32 %v526_v15, %v2262_v43  ;;  %1417 = vmatprep.mubr.bf16.mxu0 %v835_v9  ;;  %v787_v35 = vmax.f32 %v525_v14, 0.0 }
 0x121   :  { %v600_v21 = vadd.f32 %v599_v16, %v2265_v44  ;;  %1482 = vmatprep.mubr.bf16.mxu1 %v837_v10  ;;  %v528_v24 = vpop.f32.mrf.mxu0  ;;  %1418 = vmatmul.mubr.bf16.vlgmr.msra.gmra.mxu0 %v834_v5  ;;  %v789_v36 = vmax.f32 %v598_v19, 0.0  ;;  %v2028_v5 = vld [vmem:[#allocation7 + $0x158] sm:$0xff]  }
 0x122   :  { %v601_v25 = vpop.f32.mrf.mxu1  ;;  %1483 = vmatmul.mubr.bf16.vlgmr.msra.gmra.mxu1 %v836_v13  ;;  %v529_v0 = vadd.f32 %v528_v24, %v2256_v41  ;;  %1882 = vmatpush3.bf16.msra.mxu0 %v2014_v11  ;;  %v794_v28 = vmax.f32 %v527_v20, 0.0  ;;  %v2030_v24 = vld [vmem:[#allocation7 + $0x118] sm:$0xff]  }
 0x123   :  { %v602_v26 = vadd.f32 %v601_v25, %v2259_v42  ;;  %1922 = vmatpush3.bf16.msra.mxu1 %v2015_v12  ;;  %v796_v29 = vmax.f32 %v600_v21, 0.0  ;;  %v532_v30 = vpop.f32.mrf.mxu0  ;;  %1883 = vmatprep.subr.bf16.mxu0 %v2016_v17  ;;  %v2027_v12 = vld [vmem:[#allocation7 + $0x1a0] sm:$0xff]   ;;  %v162_v25 = vsub.s32 5, %v2247_v33 }
 0x124   :  { %v605_v31 = vpop.f32.mrf.mxu1  ;;  %1923 = vmatprep.subr.bf16.mxu1 %v2017_v18  ;;  %v795_v37 = vmax.f32 %v529_v0, 0.0  ;;  %v842_v52 = vpack.c.bf16 %v794_v28, %v786_v40  ;;  %v533_v63 = vadd.f32 %v532_v30, %v2262_v43  ;;  %v2031_v30 = vld [vmem:[#allocation7 + $0x198] sm:$0xff]  }
 0x125   :  { %v797_v39 = vmax.f32 %v602_v26, 0.0  ;;  %v534_v46 = vpop.f32.mrf.mxu0  ;;  %v844_v53 = vpack.c.bf16 %v796_v29, %v788_v45  ;;  %v606_v1 = vadd.f32 %v605_v31, %v2265_v44  ;;  %v170_v31 = vsub.s32 7, %v2247_v33 }
 0x126   :  { %v607_v47 = vpop.f32.mrf.mxu1  ;;  %v843_v48 = vpack.c.bf16 %v795_v37, %v787_v35  ;;  %1884 = vmatpush3.bf16.msra.mxu0 %v2018_v27  ;;  %v535_v54 = vadd.f32 %v534_v46, %v2256_v41  ;;  %v802_v17 = vmax.f32 %v533_v63, 0.0  ;;  %v2033_v37 = vld [vmem:[#allocation7 + $0x1d0] sm:$0xff]  }
 0x127   :  { %v845_v49 = vpack.c.bf16 %v797_v39, %v789_v36  ;;  %1924 = vmatpush3.bf16.msra.mxu1 %v2019_v32  ;;  %v536_v55 = vpop.f32.mrf.mxu0  ;;  %1885 = vmatprep.subr.bf16.mxu0 %v2020_v34  ;;  %v608_v59 = vadd.f32 %v607_v47, %v2259_v42  ;;  %v804_v18 = vmax.f32 %v606_v1, 0.0  ;;  %v2032_v32 = vld [vmem:[#allocation7 + $0x150] sm:$0xff]   ;;  %v158_v47 = vsub.s32 4, %v2247_v33 }
 0x128   :  { %v609_v56 = vpop.f32.mrf.mxu1  ;;  %v537_v60 = vadd.f32 %v536_v55, %v2262_v43  ;;  %1425 = vmatprep.mubr.bf16.mxu0 %v843_v48  ;;  %1925 = vmatprep.subr.bf16.mxu1 %v2021_v50  ;;  %v803_v13 = vmax.f32 %v535_v54, 0.0  ;;  %v166_v48 = vsub.s32 6, %v2247_v33  ;;  %v2304_v54 = vrot.slane %v2253_v38, %v162_v25  ;;  %v2035_v33 = vld [vmem:[#allocation7 + $0x190] sm:$0xff]  }
 0x129   :  { %v610_v61 = vadd.f32 %v609_v56, %v2265_v44  ;;  %1490 = vmatprep.mubr.bf16.mxu1 %v845_v49  ;;  %v538_v2 = vpop.f32.mrf.mxu0  ;;  %1426 = vmatmul.mubr.bf16.gmra.mxu0 %v842_v52  ;;  %v805_v14 = vmax.f32 %v608_v59, 0.0  ;;  %v2307_v55 = vrot.slane %v2253_v38, %v170_v31  ;;  %v2036_v56 = vld [vmem:[#allocation7 + $0x148] sm:$0xff]  }
 0x12a   :  { %v611_v3 = vpop.f32.mrf.mxu1  ;;  %1491 = vmatmul.mubr.bf16.gmra.mxu1 %v844_v53  ;;  %v539_v4 = vadd.f32 %v538_v2, %v2256_v41  ;;  %1886 = vmatpush3.bf16.msra.mxu0 %v2022_v51  ;;  %v810_v8 = vmax.f32 %v537_v60, 0.0  ;;  %v2034_v51 = vld [vmem:[#allocation7 + $0x110] sm:$0xff]  }
 0x12b   :  { %v612_v6 = vadd.f32 %v611_v3, %v2259_v42  ;;  %v812_v9 = vmax.f32 %v610_v61, 0.0  ;;  %1926 = vmatpush3.bf16.msra.mxu1 %v2023_v57  ;;  %v542_v10 = vpop.f32.mrf.mxu0  ;;  %1887 = vmatprep.subr.bf16.mxu0 %v2024_v58  ;;  %v2310_v61 = vrot.slane %v2253_v38, %v158_v47 }
 0x12c   :  { %v615_v11 = vpop.f32.mrf.mxu1  ;;  %v811_v15 = vmax.f32 %v539_v4, 0.0  ;;  %1927 = vmatprep.subr.bf16.mxu1 %v2025_v62  ;;  %v850_v0 = vpack.c.bf16 %v810_v8, %v802_v17  ;;  %v543_v39 = vadd.f32 %v542_v10, %v2262_v43  ;;  %v2313_v62 = vrot.slane %v2253_v38, %v166_v48  ;;  %v2037_v4 = vld [vmem:[#allocation7 + $0x1c8] sm:$0xff]  }
 0x12d   :  { %v813_v16 = vmax.f32 %v612_v6, 0.0  ;;  %v544_v19 = vpop.f32.mrf.mxu0  ;;  %v852_v26 = vpack.c.bf16 %v812_v9, %v804_v18  ;;  %v616_v40 = vadd.f32 %v615_v11, %v2265_v44  ;;  %v2038_v6 = vld [vmem:[#allocation7 + $0x108] sm:$0xff]  }
 0x12e   :  { %v617_v20 = vpop.f32.mrf.mxu1  ;;  %v851_v21 = vpack.c.bf16 %v811_v15, %v803_v13  ;;  %1888 = vmatpush3.bf16.msra.mxu0 %v2026_v7  ;;  %v545_v27 = vadd.f32 %v544_v19, %v2256_v41  ;;  %v818_v59 = vmax.f32 %v543_v39, 0.0  ;;  %v2041_v15 = vld [vmem:[#allocation7 + $0x1c0] sm:$0xff]  }
 0x12f   :  { %v853_v22 = vpack.c.bf16 %v813_v16, %v805_v14  ;;  %1928 = vmatpush3.bf16.msra.mxu1 %v2027_v12  ;;  %v546_v28 = vpop.f32.mrf.mxu0  ;;  %1889 = vmatprep.subr.bf16.mxu0 %v2028_v5  ;;  %v618_v34 = vadd.f32 %v617_v20, %v2259_v42  ;;  %v820_v60 = vmax.f32 %v616_v40, 0.0  ;;  %v2039_v12 = vld [vmem:[#allocation7 + $0x188] sm:$0xff]   ;;  %v2040_v5 = vld [vmem:[#allocation7 + $0x140] sm:$0xff]  }
 0x130   :  { %v619_v29 = vpop.f32.mrf.mxu1  ;;  %v547_v35 = vadd.f32 %v546_v28, %v2262_v43  ;;  %1433 = vmatprep.mubr.bf16.mxu0 %v851_v21  ;;  %1929 = vmatprep.subr.bf16.mxu1 %v2029_v23 }
 0x131   :  { %v620_v36 = vadd.f32 %v619_v29, %v2265_v44  ;;  %1498 = vmatprep.mubr.bf16.mxu1 %v853_v22  ;;  %v548_v45 = vpop.f32.mrf.mxu0  ;;  %1434 = vmatmul.mubr.bf16.gmra.mxu0 %v850_v0  ;;  %v821_v57 = vmax.f32 %v618_v34, 0.0  ;;  %v2042_v22 = vld [vmem:[#allocation7 + $0x100] sm:$0xff]  }
 0x132   :  { %v621_v46 = vpop.f32.mrf.mxu1  ;;  %1499 = vmatmul.mubr.bf16.gmra.mxu1 %v852_v26  ;;  %v549_v49 = vadd.f32 %v548_v45, %v2256_v41  ;;  %1890 = vmatpush3.bf16.msra.mxu0 %v2030_v24  ;;  %v826_v52 = vmax.f32 %v547_v35, 0.0  ;;  %v819_v41 = vmax.f32 %v545_v27, 0.0  ;;  %v2043_v26 = vld [vmem:[#allocation7 + $0x180] sm:$0xff]  }
 0x133   :  { %v622_v50 = vadd.f32 %v621_v46, %v2259_v42  ;;  %v828_v53 = vmax.f32 %v620_v36, 0.0  ;;  %1930 = vmatpush3.bf16.msra.mxu1 %v2031_v30  ;;  %v658_v43 = vpop.f32.mrf.mxu0  ;;  %1891 = vmatprep.subr.bf16.mxu0 %v2032_v32 }
 0x134   :  { %v731_v44 = vpop.f32.mrf.mxu1  ;;  %v827_v42 = vmax.f32 %v549_v49, 0.0  ;;  %1931 = vmatprep.subr.bf16.mxu1 %v2033_v37  ;;  %v858_v7 = vpack.c.bf16 %v826_v52, %v818_v59  ;;  %v659_v16 = vadd.f32 %v658_v43, %v2310_v61 }
 0x135   :  { %v829_v58 = vmax.f32 %v622_v50, 0.0  ;;  %v660_v63 = vpop.f32.mrf.mxu0  ;;  %v860_v8 = vpack.c.bf16 %v828_v53, %v820_v60  ;;  %v732_v17 = vadd.f32 %v731_v44, %v2313_v62 }
 0x136   :  { %v733_v1 = vpop.f32.mrf.mxu1  ;;  %v859_v2 = vpack.c.bf16 %v827_v42, %v819_v41  ;;  %1892 = vmatpush3.bf16.msra.mxu0 %v2034_v51  ;;  %v661_v9 = vadd.f32 %v660_v63, %v2304_v54  ;;  %v774_v31 = vmax.f32 %v659_v16, 0.0 }
 0x137   :  { %v861_v3 = vpack.c.bf16 %v829_v58, %v821_v57  ;;  %1932 = vmatpush3.bf16.msra.mxu1 %v2035_v33  ;;  %v662_v10 = vpop.f32.mrf.mxu0  ;;  %1893 = vmatprep.subr.bf16.mxu0 %v2036_v56  ;;  %v734_v38 = vadd.f32 %v733_v1, %v2307_v55  ;;  %v776_v32 = vmax.f32 %v732_v17, 0.0 }
 0x138   :  { %v735_v11 = vpop.f32.mrf.mxu1  ;;  %v663_v13 = vadd.f32 %v662_v10, %v2310_v61  ;;  %1441 = vmatprep.mubr.bf16.mxu0 %v859_v2  ;;  %1933 = vmatprep.subr.bf16.mxu1 %v2037_v4  ;;  %v775_v27 = vmax.f32 %v661_v9, 0.0 }
 0x139   :  { %v736_v14 = vadd.f32 %v735_v11, %v2313_v62  ;;  %1506 = vmatprep.mubr.bf16.mxu1 %v861_v3  ;;  %v664_v18 = vpop.f32.mrf.mxu0  ;;  %1442 = vmatmul.mubr.bf16.gmra.mxu0 %v858_v7  ;;  %v777_v28 = vmax.f32 %v734_v38, 0.0 }
 0x13a   :  { %v737_v19 = vpop.f32.mrf.mxu1  ;;  %1507 = vmatmul.mubr.bf16.gmra.mxu1 %v860_v8  ;;  %v665_v20 = vadd.f32 %v664_v18, %v2304_v54  ;;  %1894 = vmatpush3.bf16.msra.mxu0 %v2038_v6  ;;  %v782_v23 = vmax.f32 %v663_v13, 0.0 }
 0x13b   :  { %v738_v21 = vadd.f32 %v737_v19, %v2307_v55  ;;  %v784_v24 = vmax.f32 %v736_v14, 0.0  ;;  %1934 = vmatpush3.bf16.msra.mxu1 %v2039_v12  ;;  %v668_v25 = vpop.f32.mrf.mxu0  ;;  %1895 = vmatprep.subr.bf16.mxu0 %v2040_v5 }
 0x13c   :  { %v741_v0 = vpop.f32.mrf.mxu1  ;;  %v783_v29 = vmax.f32 %v665_v20, 0.0  ;;  %1935 = vmatprep.subr.bf16.mxu1 %v2041_v15  ;;  %v838_v39 = vpack.c.bf16 %v782_v23, %v774_v31  ;;  %v669_v51 = vadd.f32 %v668_v25, %v2310_v61 }
 0x13d   :  { %v785_v30 = vmax.f32 %v738_v21, 0.0  ;;  %v670_v34 = vpop.f32.mrf.mxu0  ;;  %v840_v40 = vpack.c.bf16 %v784_v24, %v776_v32  ;;  %v742_v52 = vadd.f32 %v741_v0, %v2313_v62 }
 0x13e   :  { %v743_v35 = vpop.f32.mrf.mxu1  ;;  %v839_v36 = vpack.c.bf16 %v783_v29, %v775_v27  ;;  %1896 = vmatpush3.bf16.msra.mxu0 %v2042_v22  ;;  %v671_v45 = vadd.f32 %v670_v34, %v2304_v54  ;;  %v790_v1 = vmax.f32 %v669_v51, 0.0 }
 0x13f   :  { %v841_v37 = vpack.c.bf16 %v785_v30, %v777_v28  ;;  %1936 = vmatpush3.bf16.msra.mxu1 %v2043_v26  ;;  %v672_v46 = vpop.f32.mrf.mxu0  ;;  %v744_v48 = vadd.f32 %v743_v35, %v2307_v55  ;;  %v792_v2 = vmax.f32 %v742_v52, 0.0 }
 0x140   :  { %v745_v47 = vpop.f32.mrf.mxu1  ;;  %v673_v49 = vadd.f32 %v672_v46, %v2310_v61  ;;  %1547 = vmatprep.mubr.bf16.mxu0 %v839_v36  ;;  %v791_v58 = vmax.f32 %v671_v45, 0.0 }
 0x141   :  { %v746_v50 = vadd.f32 %v745_v47, %v2313_v62  ;;  %1612 = vmatprep.mubr.bf16.mxu1 %v841_v37  ;;  %v674_v53 = vpop.f32.mrf.mxu0  ;;  %1548 = vmatmul.mubr.bf16.vlgmr.msra.gmra.mxu0 %v838_v39  ;;  %v793_v59 = vmax.f32 %v744_v48, 0.0 }
 0x142   :  { %v747_v43 = vpop.f32.mrf.mxu1  ;;  %v675_v44 = vadd.f32 %v674_v53, %v2304_v54  ;;  %1613 = vmatmul.mubr.bf16.vlgmr.msra.gmra.mxu1 %v840_v40  ;;  %v798_v56 = vmax.f32 %v673_v49, 0.0 }
 0x143   :  { %v748_v33 = vadd.f32 %v747_v43, %v2307_v55  ;;  %v800_v41 = vmax.f32 %v746_v50, 0.0  ;;  %v678_v57 = vpop.f32.mrf.mxu0 }
 0x144   :  { %v751_v42 = vpop.f32.mrf.mxu1  ;;  %v799_v60 = vmax.f32 %v675_v44, 0.0  ;;  %v846_v8 = vpack.c.bf16 %v798_v56, %v790_v1  ;;  %v679_v14 = vadd.f32 %v678_v57, %v2310_v61 }
 0x145   :  { %v801_v63 = vmax.f32 %v748_v33, 0.0  ;;  %v680_v3 = vpop.f32.mrf.mxu0  ;;  %v848_v9 = vpack.c.bf16 %v800_v41, %v792_v2  ;;  %v752_v15 = vadd.f32 %v751_v42, %v2313_v62 }
 0x146   :  { %v753_v4 = vpop.f32.mrf.mxu1  ;;  %v847_v6 = vpack.c.bf16 %v799_v60, %v791_v58  ;;  %v681_v10 = vadd.f32 %v680_v3, %v2304_v54  ;;  %v806_v27 = vmax.f32 %v679_v14, 0.0 }
 0x147   :  { %v849_v7 = vpack.c.bf16 %v801_v63, %v793_v59  ;;  %v682_v11 = vpop.f32.mrf.mxu0  ;;  %v754_v5 = vadd.f32 %v753_v4, %v2307_v55  ;;  %v808_v28 = vmax.f32 %v752_v15, 0.0 }
 0x148   :  { %v755_v12 = vpop.f32.mrf.mxu1  ;;  %v683_v38 = vadd.f32 %v682_v11, %v2310_v61  ;;  %1555 = vmatprep.mubr.bf16.mxu0 %v847_v6  ;;  %v807_v24 = vmax.f32 %v681_v10, 0.0 }
 0x149   :  { %v756_v13 = vadd.f32 %v755_v12, %v2313_v62  ;;  %1620 = vmatprep.mubr.bf16.mxu1 %v849_v7  ;;  %v684_v16 = vpop.f32.mrf.mxu0  ;;  %1556 = vmatmul.mubr.bf16.gmra.mxu0 %v846_v8  ;;  %v809_v25 = vmax.f32 %v754_v5, 0.0 }
 0x14a   :  { %v757_v17 = vpop.f32.mrf.mxu1  ;;  %v685_v18 = vadd.f32 %v684_v16, %v2304_v54  ;;  %1621 = vmatmul.mubr.bf16.gmra.mxu1 %v848_v9  ;;  %v814_v20 = vmax.f32 %v683_v38, 0.0 }
 0x14b   :  { %v758_v19 = vadd.f32 %v757_v17, %v2307_v55  ;;  %v816_v21 = vmax.f32 %v756_v13, 0.0  ;;  %v688_v22 = vpop.f32.mrf.mxu0 }
 0x14c   :  { %v761_v23 = vpop.f32.mrf.mxu1  ;;  %v815_v0 = vmax.f32 %v685_v18, 0.0  ;;  %v854_v34 = vpack.c.bf16 %v814_v20, %v806_v27  ;;  %v689_v47 = vadd.f32 %v688_v22, %v2310_v61 }
 0x14d   :  { %v817_v26 = vmax.f32 %v758_v19, 0.0  ;;  %v690_v29 = vpop.f32.mrf.mxu0  ;;  %v856_v35 = vpack.c.bf16 %v816_v21, %v808_v28  ;;  %v762_v50 = vadd.f32 %v761_v23, %v2313_v62 }
 0x14e   :  { %v763_v30 = vpop.f32.mrf.mxu1  ;;  %v855_v31 = vpack.c.bf16 %v815_v0, %v807_v24  ;;  %v691_v36 = vadd.f32 %v690_v29, %v2304_v54  ;;  %v822_v57 = vmax.f32 %v689_v47, 0.0 }
 0x14f   :  { %v857_v32 = vpack.c.bf16 %v817_v26, %v809_v25  ;;  %v692_v37 = vpop.f32.mrf.mxu0  ;;  %v764_v40 = vadd.f32 %v763_v30, %v2307_v55  ;;  %v824_v42 = vmax.f32 %v762_v50, 0.0  ;;  %v2366_v25 = vld [vmem:[%s2424_s4] ss:$0 sm:$0xff] }
 0x150   :  { %v765_v39 = vpop.f32.mrf.mxu1  ;;  %v693_v45 = vadd.f32 %v692_v37, %v2310_v61  ;;  %1563 = vmatprep.mubr.bf16.mxu0 %v855_v31  ;;  %v823_v53 = vmax.f32 %v691_v36, 0.0 }
 0x151   :  { %v766_v46 = vadd.f32 %v765_v39, %v2313_v62  ;;  %1628 = vmatprep.mubr.bf16.mxu1 %v857_v32  ;;  %v694_v48 = vpop.f32.mrf.mxu0  ;;  %1564 = vmatmul.mubr.bf16.gmra.mxu0 %v854_v34  ;;  %v825_v44 = vmax.f32 %v764_v40, 0.0 }
 0x152   :  { %v767_v49 = vpop.f32.mrf.mxu1  ;;  %v695_v51 = vadd.f32 %v694_v48, %v2304_v54  ;;  %1629 = vmatmul.mubr.bf16.gmra.mxu1 %v856_v35  ;;  %v830_v43 = vmax.f32 %v693_v45, 0.0 }
 0x153   :  { %v768_v52 = vadd.f32 %v767_v49, %v2307_v55  ;;  %v832_v33 = vmax.f32 %v766_v46, 0.0 }
 0x154   :  { %v831_v56 = vmax.f32 %v695_v51, 0.0  ;;  %v862_v59 = vpack.c.bf16 %v830_v43, %v822_v57 }
 0x155   :  { %v833_v41 = vmax.f32 %v768_v52, 0.0  ;;  %v864_v60 = vpack.c.bf16 %v832_v33, %v824_v42 }
 0x156   :  { %v863_v58 = vpack.c.bf16 %v831_v56, %v823_v53 }
 0x157   :  { %v865_v61 = vpack.c.bf16 %v833_v41, %v825_v44 }
 0x158   :  { %1571 = vmatprep.mubr.bf16.mxu0 %v863_v58 }
 0x159   :  { %1636 = vmatprep.mubr.bf16.mxu1 %v865_v61  ;;  %1572 = vmatmul.mubr.bf16.gmra.mxu0 %v862_v59 }
 0x15a   :  { %1637 = vmatmul.mubr.bf16.gmra.mxu1 %v864_v60 }
 0x1e1   :  { %v1817_v54 = vpop.f32.mrf.mxu0 }
 0x1e2   :  { %v1857_v62 = vpop.f32.mrf.mxu1 }
 0x1e3   :  { %v1818_v55 = vpop.f32.mrf.mxu0 }
 0x1e4   :  { %v1858_v63 = vpop.f32.mrf.mxu1  ;;  %v1819_v24 = vadd.f32 %v1818_v55, %v1817_v54 }
 0x1e5   :  { %v1820_v1 = vpop.f32.mrf.mxu0  ;;  %v1859_v32 = vadd.f32 %v1858_v63, %v1857_v62 }
 0x1e6   :  { %v1860_v2 = vpop.f32.mrf.mxu1  ;;  %v1420_v29 = vadd.f32 %v1819_v24, %v2366_v25 }
 0x1e7   :  { %v1821_v3 = vpop.f32.mrf.mxu0 }
 0x1e8   :  { %v1861_v4 = vpop.f32.mrf.mxu1  ;;  %v1822_v30 = vadd.f32 %v1821_v3, %v1820_v1  ;;  %v1485_v37 = vadd.f32 %v1859_v32, %v1420_v29 }
 0x1e9   :  { %v1823_v6 = vpop.f32.mrf.mxu0  ;;  %v1862_v47 = vadd.f32 %v1861_v4, %v1860_v2 }
 0x1ea   :  { %v1863_v7 = vpop.f32.mrf.mxu1  ;;  %v1423_v39 = vadd.f32 %v1822_v30, %v2366_v25 }
 0x1eb   :  { %v1824_v8 = vpop.f32.mrf.mxu0 }
 0x1ec   :  { %v1864_v9 = vpop.f32.mrf.mxu1  ;;  %v1825_v35 = vadd.f32 %v1824_v8, %v1823_v6  ;;  %v1488_v53 = vadd.f32 %v1862_v47, %v1423_v39 }
 0x1ed   :  { %v1826_v10 = vpop.f32.mrf.mxu0  ;;  %v1865_v41 = vadd.f32 %v1864_v9, %v1863_v7 }
 0x1ee   :  { %v1866_v11 = vpop.f32.mrf.mxu1  ;;  %v1428_v51 = vadd.f32 %v1825_v35, %v2366_v25 }
 0x1ef   :  { %v1827_v12 = vpop.f32.mrf.mxu0 }
 0x1f0   :  { %v1867_v5 = vpop.f32.mrf.mxu1  ;;  %v1828_v43 = vadd.f32 %v1827_v12, %v1826_v10  ;;  %v1493_v59 = vadd.f32 %v1865_v41, %v1428_v51 }
 0x1f1   :  { %v1829_v38 = vpop.f32.mrf.mxu0  ;;  %v1868_v3 = vadd.f32 %v1867_v5, %v1866_v11 }
 0x1f2   :  { %v2347_v13 = vpop.f32.mrf.mxu1  ;;  %v1431_v54 = vadd.f32 %v1828_v43, %v2366_v25 }
 0x1f3   :  { %v1830_v14 = vpop.f32.mrf.mxu0 }
 0x1f4   :  { %v2349_v15 = vpop.f32.mrf.mxu1  ;;  %v1831_v62 = vadd.f32 %v1830_v14, %v1829_v38  ;;  %v1496_v10 = vadd.f32 %v1868_v3, %v1431_v54 }
 0x1f5   :  { %v1832_v16 = vpop.f32.mrf.mxu0  ;;  %v1871_v30 = vadd.f32 %v2349_v15, %v2347_v13 }
 0x1f6   :  { %v2351_v17 = vpop.f32.mrf.mxu1  ;;  %v1436_v12 = vadd.f32 %v1831_v62, %v2366_v25 }
 0x1f7   :  { %v1833_v18 = vpop.f32.mrf.mxu0 }
 0x1f8   :  { %v2353_v19 = vpop.f32.mrf.mxu1  ;;  %v1834_v8 = vadd.f32 %v1833_v18, %v1832_v16  ;;  %v1501_v32 = vadd.f32 %v1871_v30, %v1436_v12 }
 0x1f9   :  { %v2355_v20 = vpop.f32.mrf.mxu0  ;;  %v1874_v13 = vadd.f32 %v2353_v19, %v2351_v17 }
 0x1fa   :  { %v2357_v21 = vpop.f32.mrf.mxu1  ;;  %v1439_v16 = vadd.f32 %v1834_v8, %v2366_v25 }
 0x1fb   :  { %v2359_v22 = vpop.f32.mrf.mxu0 }
 0x1fc   :  { %v2361_v23 = vpop.f32.mrf.mxu1 }
 0x1fd   :  { %v2368_v0 = vpop.f32.mrf.mxu0  ;;  %v1877_v17 = vadd.f32 %v2361_v23, %v2357_v21 }
 0x1fe   :  { %v2370_v26 = vpop.f32.mrf.mxu1 }
 0x1ff   :  { %v2372_v27 = vpop.f32.mrf.mxu0 }
 0x200   :  { %v2374_v28 = vpop.f32.mrf.mxu1 }
 0x201   :  { %v1897_v31 = vpop.f32.mrf.mxu0 }
 0x202   :  { %v1937_v34 = vpop.f32.mrf.mxu1 }
 0x203   :  { %v1898_v36 = vpop.f32.mrf.mxu0 }
 0x204   :  { %v1899_v40 = vadd.f32 %v1898_v36, %v1897_v31  ;;  %v1938_v45 = vpop.f32.mrf.mxu1 }
 0x205   :  { %v1900_v46 = vpop.f32.mrf.mxu0  ;;  %v1939_v49 = vadd.f32 %v1938_v45, %v1937_v34  ;;  %v1837_v34 = vadd.f32 %v2359_v22, %v2355_v20  ;;  %v1840_v20 = vadd.f32 %v2372_v27, %v2368_v0 }
 0x206   :  { %v1550_v48 = vadd.f32 %v1899_v40, %v1485_v37  ;;  %v1940_v50 = vpop.f32.mrf.mxu1 }
 0x207   :  { %v1901_v52 = vpop.f32.mrf.mxu0 }
 0x208   :  { %v1615_v44 = vadd.f32 %v1939_v49, %v1550_v48  ;;  %v1902_v33 = vadd.f32 %v1901_v52, %v1900_v46  ;;  %v1941_v56 = vpop.f32.mrf.mxu1  ;;  %v1504_v46 = vadd.f32 %v1874_v13, %v1439_v16  ;;  %v1444_v48 = vadd.f32 %v1837_v34, %v2366_v25 }
 0x209   :  { %v1903_v57 = vpop.f32.mrf.mxu0  ;;  %v1942_v58 = vadd.f32 %v1941_v56, %v1940_v50 }
 0x20a   :  { %1645 = vst [vmem:[%s2425_s5] sm:$0xff] %v1615_v44  ;;  %v1553_v42 = vadd.f32 %v1902_v33, %v1488_v53  ;;  %v1943_v61 = vpop.f32.mrf.mxu1  ;;  %v1509_v44 = vadd.f32 %v1877_v17, %v1444_v48  ;;  %v1447_v33 = vadd.f32 %v1840_v20, %v2366_v25 }
 0x20b   :  { %v1904_v60 = vpop.f32.mrf.mxu0 }
 0x20c   :  { %v1618_v55 = vadd.f32 %v1942_v58, %v1553_v42  ;;  %v1905_v63 = vadd.f32 %v1904_v60, %v1903_v57  ;;  %v1944_v1 = vpop.f32.mrf.mxu1  ;;  %v1880_v57 = vadd.f32 %v2374_v28, %v2370_v26 }
 0x20d   :  { %v1906_v2 = vpop.f32.mrf.mxu0  ;;  %v1945_v6 = vadd.f32 %v1944_v1, %v1943_v61 }
 0x20e   :  { %1646 = vst [vmem:[%s2425_s5 + $0x8] sm:$0xff] %v1618_v55  ;;  %v1558_v4 = vadd.f32 %v1905_v63, %v1493_v59  ;;  %v1946_v7 = vpop.f32.mrf.mxu1  ;;  %v1512_v61 = vadd.f32 %v1880_v57, %v1447_v33 }
 0x20f   :  { %v1907_v9 = vpop.f32.mrf.mxu0 }
 0x210   :  { %v1623_v24 = vadd.f32 %v1945_v6, %v1558_v4  ;;  %v1908_v29 = vadd.f32 %v1907_v9, %v1906_v2  ;;  %v1947_v38 = vpop.f32.mrf.mxu1 }
 0x211   :  { %v1909_v14 = vpop.f32.mrf.mxu0  ;;  %v1948_v5 = vadd.f32 %v1947_v38, %v1946_v7 }
 0x212   :  { %1647 = vst [vmem:[%s2425_s5 + $0x10] sm:$0xff] %v1623_v24  ;;  %v1561_v11 = vadd.f32 %v1908_v29, %v1496_v10  ;;  %v1949_v31 = vpop.f32.mrf.mxu1 }
 0x213   :  { %v1910_v18 = vpop.f32.mrf.mxu0 }
 0x214   :  { %v1626_v35 = vadd.f32 %v1948_v5, %v1561_v11  ;;  %v1911_v36 = vadd.f32 %v1910_v18, %v1909_v14  ;;  %v1950_v37 = vpop.f32.mrf.mxu1 }
 0x215   :  { %v1912_v15 = vpop.f32.mrf.mxu0  ;;  %v1951_v40 = vadd.f32 %v1950_v37, %v1949_v31 }
 0x216   :  { %1648 = vst [vmem:[%s2425_s5 + $0x18] sm:$0xff] %v1626_v35  ;;  %v1566_v39 = vadd.f32 %v1911_v36, %v1501_v32  ;;  %v1952_v45 = vpop.f32.mrf.mxu1 }
 0x217   :  { %v1913_v47 = vpop.f32.mrf.mxu0 }
 0x218   :  { %v1631_v22 = vadd.f32 %v1951_v40, %v1566_v39  ;;  %v1914_v49 = vadd.f32 %v1913_v47, %v1912_v15  ;;  %v1953_v50 = vpop.f32.mrf.mxu1 }
 0x219   :  { %v1915_v51 = vpop.f32.mrf.mxu0  ;;  %v1954_v52 = vadd.f32 %v1953_v50, %v1952_v45 }
 0x21a   :  { %1649 = vst [vmem:[%s2425_s5 + $0x20] sm:$0xff] %v1631_v22  ;;  %v1569_v19 = vadd.f32 %v1914_v49, %v1504_v46  ;;  %v1955_v53 = vpop.f32.mrf.mxu1 }
 0x21b   :  { %v1916_v43 = vpop.f32.mrf.mxu0 }
 0x21c   :  { %v1634_v56 = vadd.f32 %v1954_v52, %v1569_v19  ;;  %v1917_v0 = vadd.f32 %v1916_v43, %v1915_v51  ;;  %v1956_v27 = vpop.f32.mrf.mxu1 }
 0x21d   :  { %v1918_v41 = vpop.f32.mrf.mxu0  ;;  %v1957_v23 = vadd.f32 %v1956_v27, %v1955_v53 }
 0x21e   :  { %1650 = vst [vmem:[%s2425_s5 + $0x28] sm:$0xff] %v1634_v56  ;;  %v1574_v21 = vadd.f32 %v1917_v0, %v1509_v44  ;;  %v1958_v42 = vpop.f32.mrf.mxu1 }
 0x21f   :  { %v1919_v58 = vpop.f32.mrf.mxu0 }
 0x220   :  { %v1639_v59 = vadd.f32 %v1957_v23, %v1574_v21  ;;  %v1920_v60 = vadd.f32 %v1919_v58, %v1918_v41  ;;  %v1959_v54 = vpop.f32.mrf.mxu1 }
 0x221   :  { %v1960_v62 = vadd.f32 %v1959_v54, %v1958_v42 }
 0x222   :  { %1651 = vst [vmem:[%s2425_s5 + $0x30] sm:$0xff] %v1639_v59  ;;  %v1577_v25 = vadd.f32 %v1920_v60, %v1512_v61 }
 0x224   :  { %v1642_v55 = vadd.f32 %v1960_v62, %v1577_v25 }
 0x226   :  { %1652 = vst [vmem:[%s2425_s5 + $0x38] sm:$0xff] %v1642_v55 }
 0x227   :  { %1657 = vsyncpa [#allocation3], 1 }
 0x228   :  { %1658 = vsyncpa [#allocation5], 1 }
 0x229   :  { %1659 = vsyncpa [#allocation8], 1 }

</bundles_post_ra>
